<compile_context>
chip_gen: v7x
topology: tpu7x:2x2x1
jax: 0.10.0
libtpu: 0.0.40
codegen_flags: <defaults>
</compile_context>

<pallas_src>
import functools

import jax
import jax.numpy as jnp
import numpy as np
from jax.experimental import pallas as pl
from jax.experimental.pallas import tpu as pltpu


def _vq_kernel(hw, x_ref, neg2e_ref, et_ref, e2_ref,
               q_ref, idx_ref, err_ref, cnt_ref):
    # x_ref:     (1, D, T)  input tile: channels on sublanes, spatial on lanes
    # neg2e_ref: (K, D)     -2 * codebook (resident in VMEM)
    # et_ref:    (D, K)     codebook^T (resident)
    # e2_ref:    (K, 1)     precomputed ||e||^2 per code (resident)
    # q_ref:     (1, D, T)  quantized tile (same layout as input)
    # idx_ref:   (1, 1, T)  argmin code index per spatial column (lane-dense)
    # err_ref:   (1, 1, 1)  per-tile partial sum of squared error
    # cnt_ref:   (1, K, 1)  per-tile partial per-code counts
    t_idx = pl.program_id(1)
    t = x_ref.shape[2]
    k = neg2e_ref.shape[0]

    x = x_ref[0].astype(jnp.float32)                                 # (D, T)

    # Distances up to a per-column constant: ||e||^2 - 2 e.x  ->  (K, T).
    # (||x||^2 dropped: constant per column, does not change the argmin.)
    d = jnp.dot(neg2e_ref[...], x,
                preferred_element_type=jnp.float32) + e2_ref[...]    # (K, T)

    # argmin over codes (sublane axis) with first-occurrence tie-break (torch).
    iota_k = jax.lax.broadcasted_iota(jnp.int32, d.shape, 0)         # (K, T)
    dmin = jnp.min(d, axis=0, keepdims=True)                         # (1, T)
    idx = jnp.min(jnp.where(d == dmin, iota_k, k),
                  axis=0, keepdims=True)                             # (1, T)

    # Lane-validity mask for the ragged last spatial tile (no HBM pre-padding).
    col = jax.lax.broadcasted_iota(jnp.int32, (1, t), 1) + t_idx * t
    valid = col < hw                                                 # (1, T) bool

    # Out-of-bounds lanes -> index K -> all-zero one-hot column, so the per-code
    # counts need no extra mask multiply (their q/idx writes are OOB-dropped).
    idx = jnp.where(valid, idx, k)
    enc = (iota_k == idx).astype(jnp.float32)                        # (K, T)

    q = jnp.dot(et_ref[...], enc,
                preferred_element_type=jnp.float32)                  # (D, T)

    q_ref[0] = q.astype(q_ref.dtype)
    idx_ref[0] = idx

    # where-mask (not multiply) so garbage/NaN read past hw cannot poison stats.
    diff = jnp.where(valid, q - x, 0.0)                              # (D, T)
    err_ref[...] = jnp.sum(diff * diff).reshape(1, 1, 1)
    cnt_ref[...] = jnp.sum(enc, axis=1, keepdims=True)[None]         # (1, K, 1)


def _choose_thw(n, hw, d, k, vmem_budget_bytes=32 * 1024 * 1024):
    """Spatial (lane) tile: multiple of 128 (or the full HW extent),
    VMEM-budgeted, and small enough that the grid has >= ~4 steps so the
    'parallel' axes can be sharded across both v7x TensorCores."""
    per_col = 4 * (4 * d + 3 * k + 8)       # ~f32 working-set bytes per column
    t = (vmem_budget_bytes // per_col // 128) * 128
    t = max(128, min(t, 65536))
    if t >= hw:
        t = hw                              # full extent is always a legal block
    while n * (-(-hw // t)) < 4 and t > 128:
        half = (t // 2 // 128) * 128
        if half < 128:
            break
        t = half
    return t


@functools.partial(jax.jit, static_argnames=("commitment_cost", "t_hw"))
def vector_quantizer_forward(x_nchw, embedding, *, commitment_cost=0.25, t_hw=None):
    """Forward pass of VectorQuantizer.

    Args:
      x_nchw:    (N, C, H, W) inputs (C == embedding_dim).
      embedding: (K, D) codebook.
    Returns:
      (loss, quantized_nchw, perplexity, encodings) matching the PyTorch module.
    """
    n, c, h, w = x_nchw.shape
    k, d = embedding.shape
    assert c == d, "channel dim must equal embedding_dim"
    hw = h * w
    m = n * hw
    in_dtype = x_nchw.dtype

    # Free view: keep the native NCHW layout (channels on sublanes in-kernel).
    x3 = x_nchw.reshape(n, d, hw)

    if t_hw is None:
        t_hw = _choose_thw(n, hw, d, k)
    n_t = -(-hw // t_hw)

    emb = embedding.astype(jnp.float32)
    neg2e = -2.0 * emb                                    # (K, D), -2 folded in
    e_t = emb.T                                           # (D, K)
    e2 = jnp.sum(emb * emb, axis=1, keepdims=True)        # (K, 1)

    out_shapes = (
        jax.ShapeDtypeStruct((n, d, hw), in_dtype),        # quantized (NCHW view)
        jax.ShapeDtypeStruct((n, 1, hw), jnp.int32),       # lane-dense indices
        jax.ShapeDtypeStruct((n * n_t, 1, 1), jnp.float32),  # per-tile sq-err
        jax.ShapeDtypeStruct((n * n_t, k, 1), jnp.float32),  # per-tile counts
    )

    cost = pl.CostEstimate(
        flops=4 * m * k * d,                               # two (M,K,D) matmuls
        transcendentals=0,
        bytes_accessed=(2 * m * d * jnp.dtype(in_dtype).itemsize
                        + m * 4 + 3 * k * d * 4 + n * n_t * (k + 1) * 4),
    )

    # NOTE: the three codebook inputs are grid-invariant; pl.Buffered(1) on their
    # specs would save one VMEM copy each (left at the default for compatibility).
    quant3, idx3, err_part, cnt_part = pl.pallas_call(
        functools.partial(_vq_kernel, hw),
        out_shape=out_shapes,
        grid_spec=pltpu.PrefetchScalarGridSpec(
            num_scalar_prefetch=0,
            grid=(n, n_t),
            in_specs=[
                pl.BlockSpec((1, d, t_hw), lambda i, j: (i, 0, j)),  # input tile
                pl.BlockSpec((k, d), lambda i, j: (0, 0)),           # -2*e, resident
                pl.BlockSpec((d, k), lambda i, j: (0, 0)),           # e^T, resident
                pl.BlockSpec((k, 1), lambda i, j: (0, 0)),           # ||e||^2, resident
            ],
            out_specs=[
                pl.BlockSpec((1, d, t_hw), lambda i, j: (i, 0, j)),
                pl.BlockSpec((1, 1, t_hw), lambda i, j: (i, 0, j)),
                pl.BlockSpec((1, 1, 1), lambda i, j: (i * n_t + j, 0, 0)),
                pl.BlockSpec((1, k, 1), lambda i, j: (i * n_t + j, 0, 0)),
            ],
        ),
        compiler_params=pltpu.CompilerParams(
            # No carried accumulators -> both axes shard across v7x TensorCores.
            dimension_semantics=("parallel", "parallel"),
            # 48 MiB: headroom below v7x's 64 MiB physical VMEM per TC.
            vmem_limit_bytes=48 * 1024 * 1024,
        ),
        cost_estimate=cost,
    )(x3, neg2e, e_t, e2)

    # Cheap scalar glue in JAX (O(num_tiles * K)).
    sq_err = jnp.sum(err_part)
    counts = jnp.sum(cnt_part, axis=(0, 2))               # (K,)

    mse = sq_err / jnp.float32(m * d)
    # q_latent_loss and e_latent_loss have identical forward values (detach only
    # affects gradients): loss = q_latent + commitment_cost * e_latent.
    loss = (1.0 + jnp.float32(commitment_cost)) * mse

    avg_probs = counts / jnp.float32(m)
    perplexity = jnp.exp(-jnp.sum(avg_probs * jnp.log(avg_probs + 1e-10)))

    # Indices are already in NHWC-flat order (n, then h*w).  The module returns
    # the full one-hot; build it outside so kernel HBM writeback stays O(M*D+M).
    idx = idx3.reshape(m)
    encodings = jax.nn.one_hot(idx, k, dtype=jnp.float32)

    # Straight-through estimator: forward value is just the quantized tensor,
    # and it is already in NCHW layout (free view, no transpose).
    quantized_nchw = quant3.reshape(n, c, h, w)
    return loss, quantized_nchw, perplexity, encodings


def _reference_forward(x_nchw, embedding, commitment_cost):
    """Pure-JAX reference mirroring the PyTorch module, for validation."""
    n, c, h, w = x_nchw.shape
    k, d = embedding.shape
    flat = jnp.transpose(x_nchw, (0, 2, 3, 1)).reshape(-1, d).astype(jnp.float32)
    dist = (jnp.sum(flat ** 2, axis=1, keepdims=True)
            + jnp.sum(embedding ** 2, axis=1)
            - 2.0 * flat @ embedding.T)
    idx = jnp.argmin(dist, axis=1)
    enc = jax.nn.one_hot(idx, k, dtype=jnp.float32)
    quant = enc @ embedding
    mse = jnp.mean((quant - flat) ** 2)
    loss = mse + commitment_cost * mse
    avg_probs = jnp.mean(enc, axis=0)
    perplexity = jnp.exp(-jnp.sum(avg_probs * jnp.log(avg_probs + 1e-10)))
    quant_nchw = jnp.transpose(quant.reshape(n, h, w, c), (0, 3, 1, 2))
    return loss, quant_nchw, perplexity, enc


if __name__ == "__main__":
    # Module hyper-parameters (small synthetic sizes).
    num_embeddings = 8
    embedding_dim = 4
    commitment_cost = 0.25

    # Deterministic init: uniform(-1/K, 1/K), like the PyTorch __init__.
    key = jax.random.PRNGKey(0)
    k_emb, k_x = jax.random.split(key)
    embedding = jax.random.uniform(
        k_emb, (num_embeddings, embedding_dim), dtype=jnp.float32,
        minval=-1.0 / num_embeddings, maxval=1.0 / num_embeddings)

    # Input: NCHW, channels == embedding_dim.
    x = jax.random.normal(k_x, (2, embedding_dim, 16, 16), dtype=jnp.float32)

    loss, quantized, perplexity, encodings = vector_quantizer_forward(
        x, embedding, commitment_cost=commitment_cost)
    jax.block_until_ready((loss, quantized, perplexity, encodings))

    # Validate against the pure-JAX reference.
    r_loss, r_quant, r_perp, r_enc = _reference_forward(x, embedding, commitment_cost)
    np.testing.assert_allclose(np.asarray(loss), np.asarray(r_loss), rtol=1e-5, atol=1e-6)
    np.testing.assert_allclose(np.asarray(quantized), np.asarray(r_quant), rtol=1e-5, atol=1e-6)
    np.testing.assert_allclose(np.asarray(perplexity), np.asarray(r_perp), rtol=1e-5, atol=1e-6)
    np.testing.assert_allclose(np.asarray(encodings), np.asarray(r_enc), rtol=1e-5, atol=1e-6)

    print("KERNEL_OK")
</pallas_src>

<mosaic_0001>
module attributes {stable_mosaic.version = 11 : i64} {
  func.func @_vq_kernel(%arg0: i32, %arg1: i32, %arg2: memref<1x4x128xf32, #tpu.memory_space<vmem>>, %arg3: memref<8x4xf32, #tpu.memory_space<vmem>>, %arg4: memref<4x8xf32, #tpu.memory_space<vmem>>, %arg5: memref<8x1xf32, #tpu.memory_space<vmem>>, %arg6: memref<1x4x128xf32, #tpu.memory_space<vmem>>, %arg7: memref<1x1x128xi32, #tpu.memory_space<vmem>>, %arg8: memref<1x1x1xf32, #tpu.memory_space<vmem>>, %arg9: memref<1x8x1xf32, #tpu.memory_space<vmem>>) attributes {dimension_semantics = [#tpu.dimension_semantics<parallel>, #tpu.dimension_semantics<parallel>], iteration_bounds = array<i64: 2, 2>, scalar_prefetch = 0 : i64, scratch_operands = 0 : i64, tpu.core_type = #tpu.core_type<tc>, window_params = [{transform_indices = @transform_0, window_bounds = array<i64: 1, 4, 128>}, {pipeline_mode = #tpu.pipeline_mode<synchronous>, transform_indices = @transform_1, window_bounds = array<i64: 8, 4>}, {pipeline_mode = #tpu.pipeline_mode<synchronous>, transform_indices = @transform_2, window_bounds = array<i64: 4, 8>}, {pipeline_mode = #tpu.pipeline_mode<synchronous>, transform_indices = @transform_3, window_bounds = array<i64: 8, 1>}, {transform_indices = @transform_4, window_bounds = array<i64: 1, 4, 128>}, {transform_indices = @transform_5, window_bounds = array<i64: 1, 1, 128>}, {transform_indices = @transform_6, window_bounds = array<i64: 1, 1, 1>}, {transform_indices = @transform_7, window_bounds = array<i64: 1, 8, 1>}]} {
    %c0 = arith.constant 0 : index
    %c0_0 = arith.constant 0 : index
    %c0_1 = arith.constant 0 : index
    %0 = vector.load %arg2[%c0, %c0_0, %c0_1] : memref<1x4x128xf32, #tpu.memory_space<vmem>>, vector<1x4x128xf32>
    %1 = vector.shape_cast %0 : vector<1x4x128xf32> to vector<4x128xf32>
    %c0_2 = arith.constant 0 : index
    %c0_3 = arith.constant 0 : index
    %2 = vector.load %arg3[%c0_2, %c0_3] : memref<8x4xf32, #tpu.memory_space<vmem>>, vector<8x4xf32>
    %cst = arith.constant dense<0.000000e+00> : vector<8x128xf32>
    %3 = tpu.matmul %2, %1, %cst {dimension_numbers = #tpu.dot_dimension_numbers<[1], [0], [0], [1], [0, 0, 1, 1], [], []>} : vector<8x4xf32>, vector<4x128xf32>, vector<8x128xf32> -> vector<8x128xf32>
    %c0_4 = arith.constant 0 : index
    %c0_5 = arith.constant 0 : index
    %4 = vector.load %arg5[%c0_4, %c0_5] : memref<8x1xf32, #tpu.memory_space<vmem>>, vector<8x1xf32>
    %5 = vector.broadcast %4 : vector<8x1xf32> to vector<8x128xf32>
    %6 = arith.addf %3, %5 : vector<8x128xf32>
    %7 = tpu.iota {dimensions = array<i32: 0>} : vector<8x128xi32>
    %cst_6 = arith.constant dense<0x7F800000> : vector<128xf32>
    %8 = vector.multi_reduction <minimumf>, %6, %cst_6 [0] : vector<8x128xf32> to vector<128xf32>
    %9 = vector.shape_cast %8 : vector<128xf32> to vector<1x128xf32>
    %10 = vector.broadcast %9 : vector<1x128xf32> to vector<8x128xf32>
    %11 = arith.cmpf oeq, %6, %10 : vector<8x128xf32>
    %c8_i32 = arith.constant 8 : i32
    %12 = vector.broadcast %c8_i32 : i32 to vector<8x128xi32>
    %13 = arith.select %11, %7, %12 : vector<8x128xi1>, vector<8x128xi32>
    %cst_7 = arith.constant dense<2147483647> : vector<128xi32>
    %14 = vector.multi_reduction <minsi>, %13, %cst_7 [0] : vector<8x128xi32> to vector<128xi32>
    %15 = vector.shape_cast %14 : vector<128xi32> to vector<1x128xi32>
    %16 = tpu.iota {dimensions = array<i32: 1>} : vector<1x128xi32>
    %c128_i32 = arith.constant 128 : i32
    %17 = arith.muli %arg1, %c128_i32 : i32
    %18 = vector.broadcast %17 : i32 to vector<1x128xi32>
    %19 = arith.addi %16, %18 : vector<1x128xi32>
    %c256_i32 = arith.constant 256 : i32
    %20 = vector.broadcast %c256_i32 : i32 to vector<1x128xi32>
    %21 = arith.cmpi slt, %19, %20 : vector<1x128xi32>
    %c8_i32_8 = arith.constant 8 : i32
    %22 = vector.broadcast %c8_i32_8 : i32 to vector<1x128xi32>
    %23 = arith.select %21, %15, %22 : vector<1x128xi1>, vector<1x128xi32>
    %24 = vector.broadcast %23 : vector<1x128xi32> to vector<8x128xi32>
    %25 = arith.cmpi eq, %7, %24 : vector<8x128xi32>
    %26 = arith.extui %25 : vector<8x128xi1> to vector<8x128xi32>
    %27 = arith.sitofp %26 : vector<8x128xi32> to vector<8x128xf32>
    %c0_9 = arith.constant 0 : index
    %c0_10 = arith.constant 0 : index
    %28 = vector.load %arg4[%c0_9, %c0_10] : memref<4x8xf32, #tpu.memory_space<vmem>>, vector<4x8xf32>
    %cst_11 = arith.constant dense<0.000000e+00> : vector<4x128xf32>
    %29 = tpu.matmul %28, %27, %cst_11 {dimension_numbers = #tpu.dot_dimension_numbers<[1], [0], [0], [1], [0, 0, 1, 1], [], []>} : vector<4x8xf32>, vector<8x128xf32>, vector<4x128xf32> -> vector<4x128xf32>
    %c0_12 = arith.constant 0 : index
    %c0_13 = arith.constant 0 : index
    %c0_14 = arith.constant 0 : index
    %30 = vector.load %arg6[%c0_12, %c0_13, %c0_14] : memref<1x4x128xf32, #tpu.memory_space<vmem>>, vector<1x4x128xf32>
    %31 = vector.shape_cast %30 : vector<1x4x128xf32> to vector<4x128xf32>
    %32 = vector.shape_cast %29 : vector<4x128xf32> to vector<1x4x128xf32>
    tpu.vector_store %arg6[%c0_12, %c0_13, %c0_14], %32 {strides = array<i32>} : memref<1x4x128xf32, #tpu.memory_space<vmem>>, vector<1x4x128xf32>,
    %c0_15 = arith.constant 0 : index
    %c0_16 = arith.constant 0 : index
    %c0_17 = arith.constant 0 : index
    %33 = vector.load %arg7[%c0_15, %c0_16, %c0_17] : memref<1x1x128xi32, #tpu.memory_space<vmem>>, vector<1x1x128xi32>
    %34 = vector.shape_cast %33 : vector<1x1x128xi32> to vector<1x128xi32>
    %35 = vector.shape_cast %23 : vector<1x128xi32> to vector<1x1x128xi32>
    tpu.vector_store %arg7[%c0_15, %c0_16, %c0_17], %35 {strides = array<i32>} : memref<1x1x128xi32, #tpu.memory_space<vmem>>, vector<1x1x128xi32>,
    %36 = arith.subf %29, %1 : vector<4x128xf32>
    %cst_18 = arith.constant 0.000000e+00 : f32
    %37 = vector.shape_cast %21 : vector<1x128xi1> to vector<1x128xi1>
    %38 = vector.broadcast %37 : vector<1x128xi1> to vector<4x128xi1>
    %39 = vector.broadcast %cst_18 : f32 to vector<4x128xf32>
    %40 = arith.select %38, %36, %39 : vector<4x128xi1>, vector<4x128xf32>
    %41 = arith.mulf %40, %40 : vector<4x128xf32>
    %42 = vector.shape_cast %41 : vector<4x128xf32> to vector<1x4x128xf32>
    %cst_19 = arith.constant dense<0.000000e+00> : vector<1xf32>
    %43 = vector.multi_reduction <add>, %42, %cst_19 [1, 2] : vector<1x4x128xf32> to vector<1xf32>
    %44 = vector.shape_cast %43 : vector<1xf32> to vector<1x1x1xf32>
    %45 = vector.extract %44[0, 0, 0] : f32 from vector<1x1x1xf32>
    %46 = vector.broadcast %45 : f32 to vector<1x1x1xf32>
    %c0_20 = arith.constant 0 : index
    %c0_21 = arith.constant 0 : index
    %c0_22 = arith.constant 0 : index
    %47 = vector.load %arg8[%c0_20, %c0_21, %c0_22] : memref<1x1x1xf32, #tpu.memory_space<vmem>>, vector<1x1x1xf32>
    tpu.vector_store %arg8[%c0_20, %c0_21, %c0_22], %46 {strides = array<i32>} : memref<1x1x1xf32, #tpu.memory_space<vmem>>, vector<1x1x1xf32>,
    %cst_23 = arith.constant dense<0.000000e+00> : vector<8xf32>
    %48 = vector.multi_reduction <add>, %27, %cst_23 [1] : vector<8x128xf32> to vector<8xf32>
    %49 = vector.shape_cast %48 : vector<8xf32> to vector<8x1xf32>
    %50 = vector.shape_cast %49 : vector<8x1xf32> to vector<1x8x1xf32>
    %c0_24 = arith.constant 0 : index
    %c0_25 = arith.constant 0 : index
    %c0_26 = arith.constant 0 : index
    %51 = vector.load %arg9[%c0_24, %c0_25, %c0_26] : memref<1x8x1xf32, #tpu.memory_space<vmem>>, vector<1x8x1xf32>
    tpu.vector_store %arg9[%c0_24, %c0_25, %c0_26], %50 {strides = array<i32>} : memref<1x8x1xf32, #tpu.memory_space<vmem>>, vector<1x8x1xf32>,
    return
  }
  func.func @transform_0(%arg0: i32, %arg1: i32) -> (i32, i32, i32) {
    %c0_i32 = arith.constant 0 : i32
    %c0_i32_0 = arith.constant 0 : i32
    return %arg0, %c0_i32, %arg1 : i32, i32, i32
  }
  func.func @transform_1(%arg0: i32, %arg1: i32) -> (i32, i32) {
    %c0_i32 = arith.constant 0 : i32
    %c0_i32_0 = arith.constant 0 : i32
    %c0_i32_1 = arith.constant 0 : i32
    return %c0_i32, %c0_i32_0 : i32, i32
  }
  func.func @transform_2(%arg0: i32, %arg1: i32) -> (i32, i32) {
    %c0_i32 = arith.constant 0 : i32
    %c0_i32_0 = arith.constant 0 : i32
    %c0_i32_1 = arith.constant 0 : i32
    return %c0_i32, %c0_i32_0 : i32, i32
  }
  func.func @transform_3(%arg0: i32, %arg1: i32) -> (i32, i32) {
    %c0_i32 = arith.constant 0 : i32
    %c0_i32_0 = arith.constant 0 : i32
    %c0_i32_1 = arith.constant 0 : i32
    return %c0_i32, %c0_i32_0 : i32, i32
  }
  func.func @transform_4(%arg0: i32, %arg1: i32) -> (i32, i32, i32) {
    %c0_i32 = arith.constant 0 : i32
    %c0_i32_0 = arith.constant 0 : i32
    return %arg0, %c0_i32, %arg1 : i32, i32, i32
  }
  func.func @transform_5(%arg0: i32, %arg1: i32) -> (i32, i32, i32) {
    %c0_i32 = arith.constant 0 : i32
    %c0_i32_0 = arith.constant 0 : i32
    return %arg0, %c0_i32, %arg1 : i32, i32, i32
  }
  func.func @transform_6(%arg0: i32, %arg1: i32) -> (i32, i32, i32) {
    %c2_i32 = arith.constant 2 : i32
    %0 = arith.muli %arg0, %c2_i32 : i32
    %1 = arith.addi %0, %arg1 : i32
    %c0_i32 = arith.constant 0 : i32
    %c0_i32_0 = arith.constant 0 : i32
    %c0_i32_1 = arith.constant 0 : i32
    return %1, %c0_i32, %c0_i32_0 : i32, i32, i32
  }
  func.func @transform_7(%arg0: i32, %arg1: i32) -> (i32, i32, i32) {
    %c2_i32 = arith.constant 2 : i32
    %0 = arith.muli %arg0, %c2_i32 : i32
    %1 = arith.addi %0, %arg1 : i32
    %c0_i32 = arith.constant 0 : i32
    %c0_i32_0 = arith.constant 0 : i32
    %c0_i32_1 = arith.constant 0 : i32
    return %1, %c0_i32, %c0_i32_0 : i32, i32, i32
  }
}

</mosaic_0001>

<bundles_post_ra>
// kernel: vector_quantizer_forward.1
= control target key start
LH: loop header
LB: loop body
LE: loop exit
PB: predicated region body
PF: predicated region fallthrough
CT: control target
= control target key end

     0   :  { %s947_s24 = smov 0   ;;  %s949_s25 = smov 0   ;;  %s1039_s0 = inlined_call_operand.vmem [shape: f32[2,4,256], index: 0, kind: input, shape index: {}]   ;;  %s1040_s1 = inlined_call_operand.vmem [shape: f32[8,4], index: 1, kind: input, shape index: {}]   ;;  %s1041_s2 = inlined_call_operand.vmem [shape: f32[4,8], index: 2, kind: input, shape index: {}]   ;;  %s1042_s3 = inlined_call_operand.vmem [shape: f32[8,1], index: 3, kind: input, shape index: {}]   ;;  %s1043_s4 = inlined_call_operand.vmem [shape: f32[2,4,256], index: 4, kind: output, shape index: {0}]   ;;  %s1044_s5 = inlined_call_operand.vmem [shape: s32[2,1,256], index: 5, kind: output, shape index: {1}]   ;;  %s1045_s6 = inlined_call_operand.vmem [shape: f32[4,1,1], index: 6, kind: output, shape index: {2}]   ;;  %s1046_s7 = inlined_call_operand.vmem [shape: f32[4,8,1], index: 7, kind: output, shape index: {3}]  }
   0x1   :  { %s951_s26 = smov 0   ;;  %s953_s27 = smov 0  }
   0x2   :  { %s955_s28 = smov 0  }
   0x3 LB: > { %s27_s29 = sadd.s32 1, %s893_s26  ;;  %s30_s30 = sadd.s32 1, %s897_s27  ;;  %s901_s28 = sphi %s955_s28, %s18_s28   ;;  %s897_s27 = sphi %s953_s27, %s1050_s27   ;;  %s893_s26 = sphi %s951_s26, %s1049_s26   ;;  %s889_s25 = sphi %s949_s25, %s1048_s25   ;;  %s885_s24 = sphi %s947_s24, %s1047_s24  }
   0x4   : > { %p28_p0 = scmp.ge.s32.totalorder %s27_s29, 2  ;;  %p785_p1 = scmp.ge.s32.totalorder %s901_s28, 1 }
   0x5   : > { %p273_p2 = scmp.lt.s32.totalorder %s901_s28, 5 }
   0x6   : > { %s1052_s29 = smov (%p28_p0, %s27_s29), 0  ;;  %s1054_s30 = smov (!%p28_p0, %s30_s30), %s897_s27 }
   0x7   : > { %p274_p3 = pnand %p785_p1, %p273_p2  ;;  %p32_p4 = scmp.ge.s32.totalorder %s1054_s30, 2 }
   0x8   : > { %p329_p5 = scmp.lt.s32.totalorder (!%p274_p3), %s889_s25, 1  ;;  %p331_p6 = scmp.lt.s32.totalorder (!%p274_p3), %s885_s24, 1  ;;  %v903_v0 = vmov (!%p274_p3), 0.0   ;;  %vm904_vm0 = vmmov (!%p274_p3), 0   ;;  %v369_v1 = vld [vmem:[%s1042_s3] sm:$0xff] (!%p274_p3)  ;;  %v905_v2 = vmov (!%p274_p3), 0   ;;  %v453_v12 = vlaneseq (!%p274_p3) }
   0x9   : > { %s1056_s30 = smov (%p32_p4, %s1054_s30), 0  ;;  %277 = sbr.rel (%p274_p3) target bundleno = 691 (0x2b3), region = 36 }
   0xa   : > { %806 = vmatprep.subr.mxu0 (!%p274_p3), %v903_v0  ;;  %808 = vmatprep.mubr.msk.f32.mxu0 (!%p274_p3), %vm904_vm0, %v903_v0  ;;  %vm379_vm1 = vcmask (!%p274_p3), 1043456   ;;  %v368_v3 = vld [vmem:[%s1040_s1] sm:$0xff] (!%p274_p3)  ;;  %vm375_vm2 = vcmask (!%p274_p3), 31744   ;;  %v454_v15 = vshrl.u32 (!%p274_p3), %v453_v12, 7  ;;  %s796_s20 = sshll.u32 (!%p274_p3), %s885_s24, 7  ;;  %v473_v19 = vand.u32 (!%p274_p3), 127, %v453_v12 }
   0xb   : > { %862 = vset.pattern.permute.xlu0 (!%p274_p3), %v905_v2  ;;  %811 = vmatprep.subr.mxu1 (!%p274_p3), %v903_v0  ;;  %v475_v20 = vstv (!%p274_p3), %s796_s20  ;;  %v482_v28 = vld [vmem:[%s1041_s2] sm:$0xf] (!%p274_p3)  ;;  %vm483_vm8 = vcmask (!%p274_p3), 64512   ;;  %v906_v29 = vmov (!%p274_p3), 1.0   ;;  %vm579_vm10 = vcmask (!%p274_p3), 7168  }
   0xc   : > { %372 = vperm.xlu0 (!%p274_p3), %862, %v369_v1   ;;  %813 = vmatprep.mubr.msk.f32.mxu1 (!%p274_p3), %vm904_vm0, %v903_v0  ;;  %v476_v23 = vadd.s32 (!%p274_p3), %v475_v20, %v473_v19  ;;  %vm575_vm11 = vcmask (!%p274_p3), 0  }
   0xe   : > { %vm477_vm6 = vcmp.lt.s32.totalorder (!%p274_p3), %v476_v23, 256 }
  0x10   : > { %s330_s10 = scalar_select %p329_p5, %s889_s25, 1 }
  0x11   : > { %s332_s11 = scalar_select %p331_p6, %s885_s24, 1 }
  0x12   : > { %s786_s12 = sshll.u32 %s330_s10, 1  ;;  %s791_s10 = sshll.u32 %s889_s25, 1 }
  0x13   : > { %s988_s13 = sadd.s32 %s786_s12, %s332_s11  ;;  %s353_s11 = sadd.s32 %s885_s24, %s791_s10 }
  0x14   : > { %s787_s14 = sshll.u32 %s988_s13, 2  ;;  %s351_s23 = scalar_lea.vmem %s1044_s5, %s988_s13 }
  0x15   : > { %s336_s17 = scalar_lea.vmem %s1039_s0, %s787_s14  ;;  %p354_p7 = scmp.lt.s32.totalorder %s353_s11, 3 }
  0x16   : > { %v367_v4 = vld [vmem:[%s336_s17] sm:$0xf]  ;;  %s344_s20 = scalar_lea.vmem %s1043_s4, %s787_s14 }
  0x17   : > { %807 = vmatpush3.msk.msra.mxu0 %vm379_vm1, %v367_v4  ;;  %s1058_s11 = smov (!%p354_p7, %s353_s11), 3 }
  0x18   : > { %809 = vmatmul.mubr.msk.f32.vlgmr.msra.gmra.mrb[0].mxu0 %vm375_vm2, %v368_v3  ;;  %s793_s12 = sshll.u32 %s1058_s11, 3  ;;  %s356_s13 = scalar_lea.vmem %s1045_s6, %s1058_s11 }
  0x19   : > { %s364_s17 = scalar_lea.vmem %s1046_s7, %s793_s12 }
  0x8b   : > { %v373_v5 = vpop.permute.xlu0 %372 }
  0xeb   : > { %v449_v6 = vpop.f32.mrb[0].mxu0 }
  0xec   : > { %v450_v7 = vadd.f32 %v449_v6, %v373_v5  ;;  %v810_v8 = vpop.f32.mrb[1].mxu0 }
  0xee   : > { %v455_v9 = vrot.slane %v450_v7, 4 }
  0xf0   : > { %v456_v10 = vmin.f32 %v450_v7, %v455_v9 }
  0xf2   : > { %v457_v11 = vrot.slane %v456_v10, 2 }
  0xf4   : > { %v458_v13 = vmin.f32 %v456_v10, %v457_v11 }
  0xf6   : > { %v459_v14 = vrot.slane %v458_v13, 1 }
  0xf8   : > { %v460_v16 = vmin.f32 %v458_v13, %v459_v14 }
  0xfa   : > { %vm461_vm3 = vcmp.eq.f32.partialorder %v450_v7, %v460_v16 }
  0xfb   : > { %v462_v17 = vsel %vm461_vm3, %v454_v15, 8 }
  0xfc   : > { %v463_v18 = vrot.slane %v462_v17, 4 }
  0xfe   : > { %vm464_vm4 = vcmp.lt.s32.totalorder %v462_v17, %v463_v18 }
  0xff   : > { %v465_v21 = vsel %vm464_vm4, %v462_v17, %v463_v18 }
 0x100   : > { %v466_v22 = vrot.slane %v465_v21, 2 }
 0x102   : > { %vm467_vm5 = vcmp.lt.s32.totalorder %v465_v21, %v466_v22 }
 0x103   : > { %v468_v24 = vsel %vm467_vm5, %v465_v21, %v466_v22 }
 0x104   : > { %v469_v25 = vrot.slane %v468_v24, 1 }
 0x106   : > { %vm470_vm7 = vcmp.lt.s32.totalorder %v468_v24, %v469_v25 }
 0x107   : > { %v471_v26 = vsel %vm470_vm7, %v468_v24, %v469_v25 }
 0x108   : > { %v478_v27 = vsel %vm477_vm6, %v471_v26, 8 }
 0x109   : > { %vm479_vm9 = vcmp.eq.s32.totalorder %v454_v15, %v478_v27  ;;  %558 = vst [vmem:[%s351_s23] sm:$0x1] %v478_v27 }
 0x10a   : > { %812 = vmatpush3.msk.msra.mxu1 %vm479_vm9, %v906_v29  ;;  %v797_v30 = vsel %vm479_vm9, 1.0, %v903_v0 }
 0x10b   : > { %814 = vmatmul.mubr.msk.f32.vlgmr.msra.gmra.mrb[0].mxu1 %vm483_vm8, %v482_v28  ;;  %577 = vadd.xlane.f32.xlu1 %v797_v30 }
 0x198   : > { %v578_v31 = vpop.xlane.xlu1 %577 }
 0x199   : > { %580 = vst.msk [vmem:[%s364_s17] sm:$0xff] %vm579_vm10, %v578_v31 }
 0x1de   : > { %v553_v32 = vpop.f32.mrb[0].mxu1 }
 0x1df   : > { %557 = vst [vmem:[%s344_s20] sm:$0xf] %v553_v32  ;;  %v559_v33 = vsub.f32 %v553_v32, %v367_v4  ;;  %v815_v34 = vpop.f32.mrb[1].mxu1 }
 0x1e1   : > { %v562_v35 = vsel %vm477_vm6, %v559_v33, 0.0 }
 0x1e2   : > { %v563_v36 = vmul.f32 %v562_v35, %v562_v35 }
 0x1e4   : > { %v564_v37 = vsel %vm379_vm1, %v563_v36, 0.0 }
 0x1e5   : > { %565 = vadd.xlane.f32.xlu0 %v564_v37 }
 0x272   : > { %v566_v38 = vpop.xlane.xlu0 %565 }
 0x273   : > { %v567_v39 = vrot.slane %v566_v38, 4 }
 0x275   : > { %v568_v40 = vadd.f32 %v567_v39, %v566_v38 }
 0x277   : > { %v569_v41 = vrot.slane %v568_v40, 2 }
 0x279   : > { %v570_v42 = vadd.f32 %v569_v41, %v568_v40 }
 0x27b   : > { %v571_v43 = vrot.slane %v570_v42, 1 }
 0x27d   : > { %v572_v44 = vadd.f32 %v571_v43, %v570_v42 }
 0x27f   : > { %816 = vpush %v572_v44 }
 0x2b0   : > { %s817_s14 = spop %816 }
 0x2b1   : > { %v574_v45 = vstv %s817_s14 }
 0x2b2   : > { %576 = vst.msk [vmem:[%s356_s13] sm:$0x1] %vm575_vm11, %v574_v45 }
 0x2b3 PF: > { %s18_s28 = sadd.s32 1, %s901_s28   ;;  %s1047_s24 = smov %s893_s26 }
 0x2b4   : > { %p15_p8 = scmp.ge.s32.totalorder %s18_s28, 6   ;;  %s1048_s25 = smov %s897_s27 }
 0x2b5   : > { %s1049_s26 = smov %s1052_s29  ;;  %s1050_s27 = smov %s1056_s30 }
 0x2b6   :  { %17 = sbr.rel (!%p15_p8) target bundleno = 3 (0x3), region = 102 }

</bundles_post_ra>
